<compile_context>
chip_gen: v7x
topology: tpu7x:2x2x1
jax: 0.10.0
libtpu: 0.0.40
codegen_flags: <defaults>
</compile_context>

<pallas_src>
import jax
import jax.numpy as jnp
from jax import lax
from jax.experimental import pallas as pl
from jax.experimental.pallas import tpu as pltpu


_CHUNK_F32_BYTES = 512 * 1024   # per-chunk budget for f32 temporaries


def _cdiv(a, b):
    return (a + b - 1) // b


def _round_up(x, m):
    return _cdiv(x, m) * m


def _round_down_pos(x, m):
    return max(m, (x // m) * m)


def _fit_tile(dim, mult, max_tile):
    """Largest tile <= max_tile (multiple of mult) that minimizes edge waste."""
    max_tile = max(mult, (max_tile // mult) * mult)
    n_blocks = _cdiv(dim, max_tile)
    return _round_up(_cdiv(dim, n_blocks), mult)


def _vmem_capacity_bytes():
    try:
        info = pltpu.get_tpu_info()
        cap = getattr(info, "vmem_capacity_bytes", None)
        if cap:
            return int(cap)
    except Exception:
        pass
    return 64 << 20   # conservative fallback (v7x per-TC VMEM)


def _make_quantile_kernel(*, tau_static, M, N, tile_rows, tile_cols,
                          chunk_rows, sub, need_row_mask, need_col_mask,
                          with_tau_ref):
    n_full = tile_rows // chunk_rows
    rem = tile_rows - n_full * chunk_rows
    n_lane_groups = tile_cols // 128

    def kernel(*refs):
        if with_tau_ref:
            tau_ref, yhat_ref, y_ref, out_ref = refs
            tau = tau_ref[0, 0]
            c_pos = 1.0 - tau          # weight when diff >= 0
            c_neg = 0.0 - tau          # weight when diff <  0
        else:
            yhat_ref, y_ref, out_ref = refs
            c_pos = 1.0 - tau_static
            c_neg = 0.0 - tau_static

        i = pl.program_id(0)
        j = pl.program_id(1)

        col_valid = None
        if need_col_mask:
            col_ids = lax.broadcasted_iota(jnp.int32, (1, tile_cols), 1)
            col_valid = col_ids < (N - j * tile_cols)
        row_limit = (M - i * tile_rows) if need_row_mask else None

        def chunk_partial(r0, rows):
            # Native-dtype loads, f32 math (pure VPU work).
            yh = yhat_ref[pl.ds(r0, rows), :].astype(jnp.float32)
            yy = y_ref[pl.ds(r0, rows), :].astype(jnp.float32)
            diff = yh - yy
            if need_row_mask or need_col_mask:
                valid = col_valid
                if need_row_mask:
                    row_ids = lax.broadcasted_iota(jnp.int32, (rows, 1), 0) + r0
                    row_valid = row_ids < row_limit
                    valid = row_valid if valid is None else jnp.logical_and(
                        row_valid, valid)
                # select (not multiply) so garbage/NaN in padded lanes -> 0
                diff = jnp.where(valid, diff, 0.0)
            prod = jnp.where(diff >= 0, c_pos, c_neg) * diff
            # Sublane fold: (rows, tc) -> (8, tc), full-vreg adds only.
            return jnp.sum(prod.reshape(rows // 8, 8, tile_cols), axis=0)

        acc = jnp.zeros((8, tile_cols), dtype=jnp.float32)
        if n_full == 1:
            acc = acc + chunk_partial(0, chunk_rows)
        elif n_full > 1:
            def body(c, a):
                r0 = pl.multiple_of(c * chunk_rows, sub)
                return a + chunk_partial(r0, chunk_rows)
            acc = lax.fori_loop(0, n_full, body, acc, unroll=True)
        if rem > 0:
            acc = acc + chunk_partial(n_full * chunk_rows, rem)

        # Lane fold: (8, tile_cols) -> (8, 128) via static, vreg-aligned
        # 128-wide slice adds (no reshape / relayout).
        lane_sum = acc[:, 0:128]
        for g in range(1, n_lane_groups):
            lane_sum = lane_sum + acc[:, g * 128:(g + 1) * 128]
        out_ref[...] = lane_sum

    return kernel


def quantile_loss(yhat, y, tau, *, target_block_bytes=None):
    """Scalar f32 = mean(((yhat - y >= 0) - tau) * (yhat - y))."""
    assert yhat.shape == y.shape, "yhat and y must have identical shapes"
    assert yhat.dtype == y.dtype, "yhat and y must have identical dtypes"
    if yhat.ndim != 2:               # flatten: the mean is shape-invariant
        yhat = yhat.reshape(1, -1)
        y = y.reshape(1, -1)
    M, N = yhat.shape
    itemsize = jnp.dtype(yhat.dtype).itemsize
    sub = 8 * max(1, 4 // itemsize)          # sublane multiple: 8 f32, 16 bf16

    vmem_cap = _vmem_capacity_bytes()
    if target_block_bytes is None:
        # ~8 MiB on 128 MiB-VMEM chips (v5e/v6e), ~5.3 MiB on 64 MiB (v7x).
        target_block_bytes = int(min(8 << 20, max(2 << 20, vmem_cap // 12)))

    # --- tiling: minimize edge waste; no wrapper-side padding ---
    row_floor = 16 * sub                                   # 128 f32 / 256 bf16
    max_tile_cols = max(128, _round_down_pos(
        target_block_bytes // (row_floor * itemsize), 128))
    tile_cols = _fit_tile(N, 128, max_tile_cols)
    max_tile_rows = max(sub, _round_down_pos(
        target_block_bytes // (tile_cols * itemsize), sub))
    tile_rows = _fit_tile(M, sub, max_tile_rows)

    # Give v7x's two TensorCores at least two parallel grid steps on
    # medium/large inputs (one extra ~0.35us step on single-TC chips).
    if (_cdiv(M, tile_rows) * _cdiv(N, tile_cols) == 1
            and M * N * itemsize >= (1 << 20)):
        if M >= 2 * sub:
            tile_rows = _fit_tile(M, sub, _round_up(_cdiv(M, 2), sub))
        elif N >= 256:
            tile_cols = _fit_tile(N, 128, _round_up(_cdiv(N, 2), 128))

    grid = (_cdiv(M, tile_rows), _cdiv(N, tile_cols))
    need_row_mask = (M % tile_rows) != 0
    need_col_mask = (N % tile_cols) != 0

    # Row chunk inside the kernel: bounds f32 temporaries to ~0.5 MiB.
    chunk_rows = min(
        tile_rows,
        max(sub, ((_CHUNK_F32_BYTES // (tile_cols * 4)) // sub) * sub))

    tau_static = None
    if isinstance(tau, (int, float)) and not isinstance(tau, bool):
        tau_static = float(tau)
    with_tau_ref = tau_static is None

    kernel = _make_quantile_kernel(
        tau_static=tau_static, M=M, N=N, tile_rows=tile_rows,
        tile_cols=tile_cols, chunk_rows=chunk_rows, sub=sub,
        need_row_mask=need_row_mask, need_col_mask=need_col_mask,
        with_tau_ref=with_tau_ref)

    in_specs = []
    args = []
    if with_tau_ref:
        in_specs.append(pl.BlockSpec(memory_space=pltpu.SMEM))   # tau (1,1)
        args.append(jnp.asarray(tau, dtype=jnp.float32).reshape(1, 1))
    in_specs += [
        pl.BlockSpec((tile_rows, tile_cols), lambda i, j: (i, j)),   # yhat tile
        pl.BlockSpec((tile_rows, tile_cols), lambda i, j: (i, j)),   # y tile
    ]
    args += [yhat, y]

    # VMEM budget: 2 inputs x 2 pipeline buffers + per-chunk f32 temporaries
    # + slack; cap derived from the chip's VMEM capacity.
    in_block_bytes = tile_rows * tile_cols * itemsize
    needed = 4 * in_block_bytes + 8 * chunk_rows * tile_cols * 4 + (8 << 20)
    vmem_limit = int(min(max(needed, int(0.6 * vmem_cap)),
                         int(0.85 * vmem_cap)))

    partials = pl.pallas_call(
        kernel,
        out_shape=jax.ShapeDtypeStruct((grid[0] * 8, grid[1] * 128),
                                       jnp.float32),
        grid_spec=pltpu.PrefetchScalarGridSpec(
            num_scalar_prefetch=0,
            grid=grid,
            in_specs=in_specs,
            out_specs=pl.BlockSpec((8, 128), lambda i, j: (i, j)),
        ),
        compiler_params=pltpu.CompilerParams(
            dimension_semantics=("parallel", "parallel"),
            vmem_limit_bytes=vmem_limit,
        ),
    )(*args)

    # Tiny final reduction over per-tile partials; divide by true count.
    return (jnp.sum(partials) / float(M * N)).astype(jnp.float32)


def quantile_loss_ref(yhat, y, tau):
    diff = yhat.astype(jnp.float32) - y.astype(jnp.float32)
    mask = (diff >= 0).astype(jnp.float32) - jnp.asarray(tau, jnp.float32)
    return jnp.mean(mask * diff)


if __name__ == "__main__":
    key = jax.random.PRNGKey(0)
    k1, k2, k3, k4, k5, k6 = jax.random.split(key, 6)

    # Case 1: small lane-aligned f32 inputs; static tau folded into the kernel.
    M, N = 16, 128
    yhat = jax.random.normal(k1, (M, N), dtype=jnp.float32)
    y = jax.random.normal(k2, (M, N), dtype=jnp.float32)
    out = jax.block_until_ready(quantile_loss(yhat, y, 0.3))
    ref = quantile_loss_ref(yhat, y, 0.3)
    assert jnp.allclose(out, ref, rtol=1e-5, atol=1e-6), (out, ref)

    # Case 2: ragged bf16 inputs (in-kernel tail masking on rows AND cols,
    # native-dtype DMA + per-chunk f32 cast). No jnp.pad anywhere.
    M2, N2 = 37, 200
    yhat2 = jax.random.normal(k3, (M2, N2), dtype=jnp.bfloat16)
    y2 = jax.random.normal(k4, (M2, N2), dtype=jnp.bfloat16)
    out2 = jax.block_until_ready(quantile_loss(yhat2, y2, 0.7))
    ref2 = quantile_loss_ref(yhat2, y2, 0.7)
    assert jnp.allclose(out2, ref2, rtol=1e-4, atol=1e-5), (out2, ref2)

    # Case 3: multi-block parallel grid + in-kernel row-chunk fori_loop +
    # ragged tails on both dims; tau passed as an array -> SMEM scalar path.
    M3, N3 = 1030, 900
    yhat3 = jax.random.normal(k5, (M3, N3), dtype=jnp.float32)
    y3 = jax.random.normal(k6, (M3, N3), dtype=jnp.float32)
    tau3 = jnp.asarray(0.45, dtype=jnp.float32)
    out3 = jax.block_until_ready(quantile_loss(yhat3, y3, tau3))
    ref3 = quantile_loss_ref(yhat3, y3, tau3)
    assert jnp.allclose(out3, ref3, rtol=1e-4, atol=1e-6), (out3, ref3)

    print("KERNEL_OK")
</pallas_src>

<mosaic_0001>
module attributes {stable_mosaic.version = 11 : i64} {
  func.func @kernel(%arg0: i32, %arg1: i32, %arg2: memref<16x128xf32, #tpu.memory_space<vmem>>, %arg3: memref<16x128xf32, #tpu.memory_space<vmem>>, %arg4: memref<8x128xf32, #tpu.memory_space<vmem>>) attributes {dimension_semantics = [#tpu.dimension_semantics<parallel>, #tpu.dimension_semantics<parallel>], iteration_bounds = array<i64: 1, 1>, scalar_prefetch = 0 : i64, scratch_operands = 0 : i64, tpu.core_type = #tpu.core_type<tc>, window_params = [{transform_indices = @transform_0, window_bounds = array<i64: 16, 128>}, {transform_indices = @transform_1, window_bounds = array<i64: 16, 128>}, {transform_indices = @transform_2, window_bounds = array<i64: 8, 128>}]} {
    %cst = arith.constant 0.000000e+00 : f32
    %0 = vector.broadcast %cst : f32 to vector<8x128xf32>
    %c0 = arith.constant 0 : index
    %c0_0 = arith.constant 0 : index
    %1 = vector.load %arg2[%c0, %c0_0] : memref<16x128xf32, #tpu.memory_space<vmem>>, vector<16x128xf32>
    %c0_1 = arith.constant 0 : index
    %c0_2 = arith.constant 0 : index
    %2 = vector.load %arg3[%c0_1, %c0_2] : memref<16x128xf32, #tpu.memory_space<vmem>>, vector<16x128xf32>
    %3 = arith.subf %1, %2 : vector<16x128xf32>
    %cst_3 = arith.constant 0.000000e+00 : f32
    %4 = vector.broadcast %cst_3 : f32 to vector<16x128xf32>
    %5 = arith.cmpf oge, %3, %4 : vector<16x128xf32>
    %cst_4 = arith.constant 0.699999988 : f32
    %cst_5 = arith.constant -3.000000e-01 : f32
    %6 = vector.broadcast %cst_4 : f32 to vector<16x128xf32>
    %7 = vector.broadcast %cst_5 : f32 to vector<16x128xf32>
    %8 = arith.select %5, %6, %7 : vector<16x128xi1>, vector<16x128xf32>
    %9 = arith.mulf %8, %3 : vector<16x128xf32>
    %10 = vector.shape_cast %9 : vector<16x128xf32> to vector<2x8x128xf32>
    %cst_6 = arith.constant dense<0.000000e+00> : vector<8x128xf32>
    %11 = vector.multi_reduction <add>, %10, %cst_6 [0] : vector<2x8x128xf32> to vector<8x128xf32>
    %12 = arith.addf %0, %11 : vector<8x128xf32>
    %c0_7 = arith.constant 0 : index
    %c0_8 = arith.constant 0 : index
    %13 = vector.load %arg4[%c0_7, %c0_8] : memref<8x128xf32, #tpu.memory_space<vmem>>, vector<8x128xf32>
    tpu.vector_store %arg4[%c0_7, %c0_8], %12 {strides = array<i32>} : memref<8x128xf32, #tpu.memory_space<vmem>>, vector<8x128xf32>,
    return
  }
  func.func @transform_0(%arg0: i32, %arg1: i32) -> (i32, i32) {
    %c0_i32 = arith.constant 0 : i32
    return %arg0, %arg1 : i32, i32
  }
  func.func @transform_1(%arg0: i32, %arg1: i32) -> (i32, i32) {
    %c0_i32 = arith.constant 0 : i32
    return %arg0, %arg1 : i32, i32
  }
  func.func @transform_2(%arg0: i32, %arg1: i32) -> (i32, i32) {
    %c0_i32 = arith.constant 0 : i32
    return %arg0, %arg1 : i32, i32
  }
}

</mosaic_0001>

<bundles_post_ra>
// kernel: tpu_custom_call.1
= control target key start
LH: loop header
LB: loop body
LE: loop exit
PB: predicated region body
PF: predicated region fallthrough
CT: control target
= control target key end

     0   :  { %7 = vsyncpa [#allocation3], 0  ;;  %s206_s0 = inlined_call_operand.hbm [shape: f32[16,128], index: 0, kind: input, shape index: {}]   ;;  %s207_s1 = inlined_call_operand.hbm [shape: f32[16,128], index: 1, kind: input, shape index: {}]   ;;  %s208_s2 = inlined_call_operand.hbm [shape: f32[8,128], index: 2, kind: output, shape index: {}]  }
   0x1   :  { %8 = vsyncpa [#allocation6], 0 }
   0x2   :  { %9 = vsyncpa [#allocation4], 0  ;;  %s149_s9 = smov [#allocation2]   ;;  %s77_s13 = scalar_lea.hbm %s206_s0, 256 }
   0x3   :  { %s15_s10 = sshll.u32 %s149_s9, 4  ;;  %p78_p0 = scmp.ne.s32.totalorder %s206_s0, %s77_s13  ;;  %s16_s10 = int_to_ptr.vmem [resolvable:$true] %s15_s10 }
   0x4   :  { %p81_p1 = scmp.lt.u32.totalorder %s77_s13, %s206_s0 }
   0x6   :  { %p83_p2 = pnand %p81_p1, %p78_p0 }
   0x8   :  { %86 = shalt.err (!%p83_p2)
}
   0x9   :  { %s87_s18 = scalar_lea.vmem %s16_s10, 256  ;;  %p92_p4 = scmp.lt.s32.totalorder %s16_s10, %s16_s10 }
   0xa   :  { %p88_p3 = scmp.ne.s32.totalorder %s16_s10, %s87_s18  ;;  %p93_p5 = scmp.lt.s32.totalorder %s87_s18, %s87_s18 }
   0xc   :  { %p94_p6 = por %p93_p5, %p92_p4 }
   0xe   :  { %p95_p7 = pnand %p94_p6, %p88_p3 }
  0x10   :  { %98 = shalt.err (!%p95_p7)
}
  0x11   :  { %s150_s19 = smov 128   ;;  %s151_s20 = smov 8  }
  0x12   :  { %21 = dma.hbm_to_vmem [thread:$0]  %s206_s0, 256, %s16_s10, [#allocation3], %s150_s19, %s150_s19, %s151_s20  }
  0x13   :  { %s152_s23 = smov [#allocation5]   ;;  %s99_s27 = scalar_lea.hbm %s207_s1, 256 }
  0x14   :  { %s27_s24 = sshll.u32 %s152_s23, 4  ;;  %p100_p8 = scmp.ne.s32.totalorder %s207_s1, %s99_s27  ;;  %s28_s24 = int_to_ptr.vmem [resolvable:$true] %s27_s24 }
  0x15   :  { %p103_p9 = scmp.lt.u32.totalorder %s99_s27, %s207_s1 }
  0x17   :  { %p105_p10 = pnand %p103_p9, %p100_p8 }
  0x19   :  { %108 = shalt.err (!%p105_p10)
}
  0x1a   :  { %s109_s4 = scalar_lea.vmem %s28_s24, 256  ;;  %p114_p12 = scmp.lt.s32.totalorder %s28_s24, %s28_s24 }
  0x1b   :  { %p110_p11 = scmp.ne.s32.totalorder %s28_s24, %s109_s4  ;;  %p115_p13 = scmp.lt.s32.totalorder %s109_s4, %s109_s4 }
  0x1d   :  { %p116_p0 = por %p115_p13, %p114_p12 }
  0x1f   :  { %p117_p1 = pnand %p116_p0, %p110_p11 }
  0x21   :  { %120 = shalt.err (!%p117_p1)
}
  0x22   :  { %33 = dma.hbm_to_vmem [thread:$0]  %s207_s1, 256, %s28_s24, [#allocation6], %s150_s19, %s150_s19, %s151_s20  }
  0x23   :  { %143 = dma.done.wait [#allocation3], 256  }
  0x24   :  { %144 = vsyncadd [#allocation3], 4294967040 }
  0x25   :  { %145 = dma.done.wait [#allocation6], 256  }
  0x26   :  { %146 = vsyncadd [#allocation6], 4294967040  ;;  %v40_v0 = vld [vmem:[#allocation2] sm:$0xff]  ;;  %v41_v1 = vld [vmem:[#allocation2 + $0x8] sm:$0xff]  ;;  %v153_v6 = vmov -0.3  }
  0x27   :  { %v42_v2 = vld [vmem:[#allocation5] sm:$0xff]  ;;  %v43_v3 = vld [vmem:[#allocation5 + $0x8] sm:$0xff]  ;;  %s154_s6 = smov [#allocation7]  }
  0x28   :  { %v44_v4 = vsub.f32 %v40_v0, %v42_v2  ;;  %v45_v5 = vsub.f32 %v41_v1, %v43_v3  ;;  %s61_s7 = sshll.u32 %s154_s6, 4  ;;  %s62_s7 = int_to_ptr.vmem [resolvable:$true] %s61_s7 }
  0x29   :  { %s121_s1 = scalar_lea.vmem %s62_s7, 128  ;;  %p126_p3 = scmp.lt.s32.totalorder %s62_s7, %s62_s7 }
  0x2a   :  { %vm46_vm0 = vcmp.ge.f32.partialorder %v44_v4, 0.0  ;;  %vm47_vm1 = vcmp.ge.f32.partialorder %v45_v5, 0.0  ;;  %p122_p2 = scmp.ne.s32.totalorder %s62_s7, %s121_s1  ;;  %p127_p4 = scmp.lt.s32.totalorder %s121_s1, %s121_s1 }
  0x2b   :  { %v48_v7 = vsel %vm46_vm0, 0.7, %v153_v6  ;;  %v49_v8 = vsel %vm47_vm1, 0.7, %v153_v6 }
  0x2c   :  { %v50_v9 = vmul.f32 %v48_v7, %v44_v4  ;;  %v51_v10 = vmul.f32 %v49_v8, %v45_v5  ;;  %p128_p5 = por %p127_p4, %p126_p3 }
  0x2e   :  { %v52_v11 = vadd.f32 %v51_v10, %v50_v9  ;;  %p129_p6 = pnand %p128_p5, %p122_p2 }
  0x30   :  { %54 = vst [vmem:[#allocation7] sm:$0xff] %v52_v11 }
  0x31   :  { %132 = shalt.err (!%p129_p6)
}
  0x32   :  { %s133_s10 = scalar_lea.hbm %s208_s2, 128 }
  0x33   :  { %p134_p7 = scmp.ne.s32.totalorder %s208_s2, %s133_s10  ;;  %p137_p8 = scmp.lt.u32.totalorder %s133_s10, %s208_s2 }
  0x35   :  { %p139_p9 = pnand %p137_p8, %p134_p7 }
  0x37   :  { %142 = shalt.err (!%p139_p9)
}
  0x38   :  { %64 = dma.vmem_to_hbm [thread:$0]  %s62_s7, 128, %s208_s2, [#allocation4]  }
  0x39   :  { %147 = dma.done.wait [#allocation4], 128  }
  0x3a   :  { %148 = vsyncadd [#allocation4], 4294967168 }
  0x3b   :  { %68 = vsyncpa [#allocation3], 1 }
  0x3c   :  { %69 = vsyncpa [#allocation6], 1 }
  0x3d   :  { %70 = vsyncpa [#allocation4], 1 }

</bundles_post_ra>
